<compile_context>
chip_gen: v7x
topology: tpu7x:2x2x1
jax: 0.10.0
libtpu: 0.0.40
codegen_flags: <defaults>
</compile_context>

<pallas_src>
import jax
import jax.numpy as jnp
from jax import lax
from jax.experimental import pallas as pl
from jax.experimental.pallas import tpu as pltpu


# Contract the last (feature) axis of both operands: (M, K) x (N, K) -> (M, N).
_CONTRACT_LAST = (((1,), (1,)), ((), ()))


def _cosine_distance_kernel(t_ref, s_ref, o_ref):
    # Native-dtype tiles feed the MXU (bf16 at full rate on v6e/v7x, f32 ok).
    t = t_ref[...]                                               # (Bt, D)
    s = s_ref[...]                                               # (Bs, D)

    # target . ss^T without materializing ss.T.
    dots = lax.dot_general(t, s, _CONTRACT_LAST,
                           preferred_element_type=jnp.float32)   # (Bt, Bs)

    # Squared row norms in f32.
    t32 = t.astype(jnp.float32)
    s32 = s.astype(jnp.float32)
    t_sq = jnp.sum(t32 * t32, axis=1, keepdims=True)             # (Bt, 1)

    # Support squared norms directly in lane orientation (1, Bs): reduce s*s
    # with a ones-row contraction instead of transposing a (Bs, 1) column.
    ones_row = jnp.ones((1, s32.shape[1]), dtype=jnp.float32)
    s_sq = lax.dot_general(ones_row, s32 * s32, _CONTRACT_LAST,
                           preferred_element_type=jnp.float32)   # (1, Bs)

    # cos = dot / max(||t||*||s||, 1e-8)  ==  dot * rsqrt(max(t_sq*s_sq, 1e-16))
    inv = lax.rsqrt(jnp.maximum(t_sq * s_sq, jnp.float32(1e-16)))  # (Bt, Bs)
    o_ref[...] = dots * inv


def _round_up(x, m):
    return (x + m - 1) // m * m


def distance_network(target, ss):
    """Cosine-similarity matrix: out[i, j] = cos(target[i], ss[j]).

    target: (Bt, D) float array, ss: (Bs, D) float array -> (Bt, Bs) float32.
    """
    bt, d = target.shape
    bs, d2 = ss.shape
    assert d == d2, "feature dims must match"

    # Zero-pad for lane-dense loads / MXU K / output stores (no effect on the
    # dot products or norms; padded rows produce 0 and are sliced off).
    bt_p = _round_up(bt, 8)
    bs_p = _round_up(bs, 128)
    d_p = _round_up(d, 128)
    tp = jnp.pad(target, ((0, bt_p - bt), (0, d_p - d)))
    sp = jnp.pad(ss, ((0, bs_p - bs), (0, d_p - d)))

    out = pl.pallas_call(
        _cosine_distance_kernel,
        out_shape=jax.ShapeDtypeStruct((bt_p, bs_p), jnp.float32),
        in_specs=[
            pl.BlockSpec(memory_space=pltpu.VMEM),
            pl.BlockSpec(memory_space=pltpu.VMEM),
        ],
        out_specs=pl.BlockSpec(memory_space=pltpu.VMEM),
    )(tp, sp)
    return out[:bt, :bs]


def distance_network_batched(target_b, ss_b):
    """Episode-batched variant: (E, Bt, D), (E, Bs, D) -> (E, Bt, Bs).

    One pallas_call with grid=(E,) amortizes launch overhead across episodes;
    the episode axis is marked "parallel" (sharded across cores on v7x).
    """
    e, bt, d = target_b.shape
    e2, bs, d2 = ss_b.shape
    assert e == e2 and d == d2

    bt_p = _round_up(bt, 8)
    bs_p = _round_up(bs, 128)
    d_p = _round_up(d, 128)
    tp = jnp.pad(target_b, ((0, 0), (0, bt_p - bt), (0, d_p - d)))
    sp = jnp.pad(ss_b, ((0, 0), (0, bs_p - bs), (0, d_p - d)))

    out = pl.pallas_call(
        _cosine_distance_kernel,
        out_shape=jax.ShapeDtypeStruct((e, bt_p, bs_p), jnp.float32),
        grid=(e,),
        in_specs=[
            pl.BlockSpec((None, bt_p, d_p), lambda i: (i, 0, 0)),
            pl.BlockSpec((None, bs_p, d_p), lambda i: (i, 0, 0)),
        ],
        out_specs=pl.BlockSpec((None, bt_p, bs_p), lambda i: (i, 0, 0)),
        compiler_params=pltpu.CompilerParams(
            dimension_semantics=("parallel",)),
    )(tp, sp)
    return out[:, :bt, :bs]


if __name__ == "__main__":
    key = jax.random.PRNGKey(0)
    k_t, k_s, k_bt, k_bs = jax.random.split(key, 4)

    # 5-shot-5-way style: 25 target embeddings, 25 support embeddings, dim 64.
    target = jax.random.normal(k_t, (25, 64), dtype=jnp.float32)
    ss = jax.random.normal(k_s, (25, 64), dtype=jnp.float32)

    out = jax.block_until_ready(distance_network(target, ss))

    # Pure-JAX reference (same math as nn.CosineSimilarity(dim=1, eps=1e-8)).
    def ref_fn(t, s):
        tn = jnp.linalg.norm(t, axis=1, keepdims=True)
        sn = jnp.linalg.norm(s, axis=1, keepdims=True)
        return (t @ s.T) / jnp.maximum(tn * sn.T, 1e-8)

    ref = ref_fn(target, ss)
    assert out.shape == (25, 25)
    assert jnp.allclose(out, ref, atol=1e-4, rtol=1e-4), float(
        jnp.max(jnp.abs(out - ref)))

    # Episode-batched path (amortizes launch overhead across episodes).
    tb = jax.random.normal(k_bt, (3, 25, 64), dtype=jnp.float32)
    sb = jax.random.normal(k_bs, (3, 25, 64), dtype=jnp.float32)
    outb = jax.block_until_ready(distance_network_batched(tb, sb))
    refb = jax.vmap(ref_fn)(tb, sb)
    assert outb.shape == (3, 25, 25)
    assert jnp.allclose(outb, refb, atol=1e-4, rtol=1e-4)

    print("KERNEL_OK")
</pallas_src>

<mosaic_0001>
module attributes {stable_mosaic.version = 11 : i64} {
  func.func @_cosine_distance_kernel(%arg0: memref<32x128xf32, #tpu.memory_space<vmem>>, %arg1: memref<128x128xf32, #tpu.memory_space<vmem>>, %arg2: memref<32x128xf32, #tpu.memory_space<vmem>>) attributes {dimension_semantics = [], scalar_prefetch = 0 : i64, scratch_operands = 0 : i64, tpu.core_type = #tpu.core_type<tc>} {
    %c0 = arith.constant 0 : index
    %c0_0 = arith.constant 0 : index
    %0 = vector.load %arg0[%c0, %c0_0] : memref<32x128xf32, #tpu.memory_space<vmem>>, vector<32x128xf32>
    %c0_1 = arith.constant 0 : index
    %c0_2 = arith.constant 0 : index
    %1 = vector.load %arg1[%c0_1, %c0_2] : memref<128x128xf32, #tpu.memory_space<vmem>>, vector<128x128xf32>
    %cst = arith.constant dense<0.000000e+00> : vector<32x128xf32>
    %2 = tpu.matmul %0, %1, %cst {dimension_numbers = #tpu.dot_dimension_numbers<[1], [1], [0], [0], [0, 0, 1, 0], [], []>} : vector<32x128xf32>, vector<128x128xf32>, vector<32x128xf32> -> vector<32x128xf32>
    %3 = arith.mulf %0, %0 : vector<32x128xf32>
    %cst_3 = arith.constant dense<0.000000e+00> : vector<32xf32>
    %4 = vector.multi_reduction <add>, %3, %cst_3 [1] : vector<32x128xf32> to vector<32xf32>
    %5 = vector.shape_cast %4 : vector<32xf32> to vector<32x1xf32>
    %cst_4 = arith.constant 1.000000e+00 : f32
    %6 = vector.broadcast %cst_4 : f32 to vector<1x128xf32>
    %7 = arith.mulf %1, %1 : vector<128x128xf32>
    %cst_5 = arith.constant dense<0.000000e+00> : vector<1x128xf32>
    %8 = tpu.matmul %6, %7, %cst_5 {dimension_numbers = #tpu.dot_dimension_numbers<[1], [1], [0], [0], [0, 0, 1, 0], [], []>} : vector<1x128xf32>, vector<128x128xf32>, vector<1x128xf32> -> vector<1x128xf32>
    %9 = vector.broadcast %5 : vector<32x1xf32> to vector<32x128xf32>
    %10 = vector.broadcast %8 : vector<1x128xf32> to vector<32x128xf32>
    %11 = arith.mulf %9, %10 : vector<32x128xf32>
    %cst_6 = arith.constant 1.000000e-16 : f32
    %12 = vector.broadcast %cst_6 : f32 to vector<32x128xf32>
    %13 = arith.maximumf %11, %12 : vector<32x128xf32>
    %14 = math.rsqrt %13 : vector<32x128xf32>
    %15 = arith.mulf %2, %14 : vector<32x128xf32>
    %c0_7 = arith.constant 0 : index
    %c0_8 = arith.constant 0 : index
    %16 = vector.load %arg2[%c0_7, %c0_8] : memref<32x128xf32, #tpu.memory_space<vmem>>, vector<32x128xf32>
    tpu.vector_store %arg2[%c0_7, %c0_8], %15 {strides = array<i32>} : memref<32x128xf32, #tpu.memory_space<vmem>>, vector<32x128xf32>,
    return
  }
}

</mosaic_0001>

<bundles_post_ra>
// kernel: tpu_custom_call.1
= control target key start
LH: loop header
LB: loop body
LE: loop exit
PB: predicated region body
PF: predicated region fallthrough
CT: control target
= control target key end

     0   :  { %7 = vsyncpa [#allocation3], 0  ;;  %s632_s0 = inlined_call_operand.hbm [shape: f32[32,128], index: 0, kind: input, shape index: {}]   ;;  %s633_s1 = inlined_call_operand.hbm [shape: f32[128,128], index: 1, kind: input, shape index: {}]   ;;  %s634_s2 = inlined_call_operand.hbm [shape: f32[32,128], index: 2, kind: output, shape index: {}]  }
   0x1   :  { %8 = vsyncpa [#allocation6], 0 }
   0x2   :  { %9 = vsyncpa [#allocation4], 0  ;;  %s540_s9 = smov [#allocation2]   ;;  %s468_s13 = scalar_lea.hbm %s632_s0, 512 }
   0x3   :  { %s15_s10 = sshll.u32 %s540_s9, 4  ;;  %p469_p0 = scmp.ne.s32.totalorder %s632_s0, %s468_s13  ;;  %s16_s10 = int_to_ptr.vmem [resolvable:$true] %s15_s10 }
   0x4   :  { %p472_p1 = scmp.lt.u32.totalorder %s468_s13, %s632_s0 }
   0x6   :  { %p474_p2 = pnand %p472_p1, %p469_p0 }
   0x8   :  { %477 = shalt.err (!%p474_p2)
}
   0x9   :  { %s478_s18 = scalar_lea.vmem %s16_s10, 512  ;;  %p483_p4 = scmp.lt.s32.totalorder %s16_s10, %s16_s10 }
   0xa   :  { %p479_p3 = scmp.ne.s32.totalorder %s16_s10, %s478_s18  ;;  %p484_p5 = scmp.lt.s32.totalorder %s478_s18, %s478_s18 }
   0xc   :  { %p485_p6 = por %p484_p5, %p483_p4 }
   0xe   :  { %p486_p7 = pnand %p485_p6, %p479_p3 }
  0x10   :  { %489 = shalt.err (!%p486_p7)
}
  0x11   :  { %s541_s19 = smov 128   ;;  %s542_s20 = smov 8  }
  0x12   :  { %21 = dma.hbm_to_vmem [thread:$0]  %s632_s0, 512, %s16_s10, [#allocation3], %s541_s19, %s541_s19, %s542_s20  }
  0x13   :  { %s543_s23 = smov [#allocation5]   ;;  %s490_s27 = scalar_lea.hbm %s633_s1, 2048 }
  0x14   :  { %s27_s24 = sshll.u32 %s543_s23, 4  ;;  %p491_p8 = scmp.ne.s32.totalorder %s633_s1, %s490_s27  ;;  %s28_s24 = int_to_ptr.vmem [resolvable:$true] %s27_s24 }
  0x15   :  { %p494_p9 = scmp.lt.u32.totalorder %s490_s27, %s633_s1 }
  0x17   :  { %p496_p10 = pnand %p494_p9, %p491_p8 }
  0x19   :  { %499 = shalt.err (!%p496_p10)
}
  0x1a   :  { %s500_s4 = scalar_lea.vmem %s28_s24, 2048  ;;  %p505_p12 = scmp.lt.s32.totalorder %s28_s24, %s28_s24 }
  0x1b   :  { %p501_p11 = scmp.ne.s32.totalorder %s28_s24, %s500_s4  ;;  %p506_p13 = scmp.lt.s32.totalorder %s500_s4, %s500_s4 }
  0x1d   :  { %p507_p0 = por %p506_p13, %p505_p12 }
  0x1f   :  { %p508_p1 = pnand %p507_p0, %p501_p11 }
  0x21   :  { %511 = shalt.err (!%p508_p1)
}
  0x22   :  { %33 = dma.hbm_to_vmem [thread:$0]  %s633_s1, 2048, %s28_s24, [#allocation6], %s541_s19, %s541_s19, %s542_s20  }
  0x23   :  { %534 = dma.done.wait [#allocation3], 512  }
  0x24   :  { %535 = vsyncadd [#allocation3], 4294966784 }
  0x25   :  { %536 = dma.done.wait [#allocation6], 2048  }
  0x26   :  { %537 = vsyncadd [#allocation6], 4294965248  ;;  %v544_v0 = vmov 0.0|0.0   ;;  %vm545_vm0 = vmmov 0   ;;  %v546_v1 = vmov 0.0   ;;  %v44_v2 = vld [vmem:[#allocation5] sm:$0xff]  ;;  %v243_v59 = vlaneseq }
  0x27   :  { %427 = vmatprep.subr.bf16.mxu1 %v544_v0  ;;  %392 = vmatprep.mubr.msk.f32.mxu1 %vm545_vm0, %v546_v1  ;;  %v45_v3 = vld [vmem:[#allocation5 + $0x8] sm:$0xff]  ;;  %v157_v4 = vmul.f32 %v44_v2, %v44_v2  ;;  %v46_v6 = vld [vmem:[#allocation5 + $0x10] sm:$0xff]  ;;  %v47_v7 = vld [vmem:[#allocation5 + $0x18] sm:$0xff]  ;;  %v547_v58 = vmov 1.0   ;;  %s548_s1 = smov [#allocation7]  }
  0x28   :  { %v158_v5 = vmul.f32 %v45_v3, %v45_v3  ;;  %v395_v8 = vpack.c.bf16 %v45_v3, %v44_v2  ;;  %v399_v9 = vpack.c.bf16 %v47_v7, %v46_v6  ;;  %v159_v11 = vmul.f32 %v46_v6, %v46_v6  ;;  %v40_v13 = vld [vmem:[#allocation2] sm:$0xff]  ;;  %v596_v14 = vld [vmem:[#allocation2 + $0x10] sm:$0xff]  ;;  %v49_v16 = vld [vmem:[#allocation5 + $0x28] sm:$0xff]  ;;  %s272_s6 = sshll.u32 %s548_s1, 4  ;;  %s273_s6 = int_to_ptr.vmem [resolvable:$true] %s272_s6 }
  0x29   :  { %v160_v12 = vmul.f32 %v47_v7, %v47_v7  ;;  %354 = vmatprep.mubr.f32.mxu0 %v40_v13  ;;  %v48_v15 = vld [vmem:[#allocation5 + $0x20] sm:$0xff]  ;;  %v147_v17 = vmul.f32 %v596_v14, %v596_v14  ;;  %v600_v20 = vld [vmem:[#allocation2 + $0x18] sm:$0xff]  ;;  %v145_v21 = vmul.f32 %v40_v13, %v40_v13  ;;  %v602_v22 = vld [vmem:[#allocation2 + $0x8] sm:$0xff]  ;;  %v162_v26 = vmul.f32 %v49_v16, %v49_v16  ;;  %s512_s7 = scalar_lea.vmem %s273_s6, 512  ;;  %p517_p3 = scmp.lt.s32.totalorder %s273_s6, %s273_s6 }
  0x2a   :  { %v428_v10 = vpack.c.bf16 %v158_v5, %v157_v4  ;;  %396 = vmatprep.subr.bf16.mxu0 %v395_v8  ;;  %v403_v19 = vpack.c.bf16 %v49_v16, %v48_v15  ;;  %v148_v23 = vmul.f32 %v600_v20, %v600_v20  ;;  %v146_v24 = vmul.f32 %v602_v22, %v602_v22  ;;  %v50_v27 = vld [vmem:[#allocation5 + $0x30] sm:$0xff]  ;;  %v51_v28 = vld [vmem:[#allocation5 + $0x38] sm:$0xff]  ;;  %v52_v33 = vld [vmem:[#allocation5 + $0x40] sm:$0xff]  ;;  %p513_p2 = scmp.ne.s32.totalorder %s273_s6, %s512_s7  ;;  %p518_p4 = scmp.lt.s32.totalorder %s512_s7, %s512_s7 }
  0x2b   :  { %398 = vmatpush3.bf16.xpose.msra.mxu0 %v395_v8  ;;  %v431_v18 = vpack.c.bf16 %v160_v12, %v159_v11  ;;  %153 = vadd.xlane.f32.xlu1 %v147_v17  ;;  %v161_v25 = vmul.f32 %v48_v15, %v48_v15  ;;  %v407_v30 = vpack.c.bf16 %v51_v28, %v50_v27  ;;  %v53_v34 = vld [vmem:[#allocation5 + $0x48] sm:$0xff]  ;;  %v54_v39 = vld [vmem:[#allocation5 + $0x50] sm:$0xff]  ;;  %v55_v40 = vld [vmem:[#allocation5 + $0x58] sm:$0xff]  ;;  %v244_v62 = vshrl.u32 %v243_v59, 7 }
  0x2c   :  { %429 = vmatpush3.bf16.xpose.msra.mxu1 %v428_v10  ;;  %400 = vmatprep.subr.bf16.mxu0 %v399_v9  ;;  %v163_v31 = vmul.f32 %v50_v27, %v50_v27  ;;  %v164_v32 = vmul.f32 %v51_v28, %v51_v28  ;;  %v411_v36 = vpack.c.bf16 %v53_v34, %v52_v33  ;;  %v56_v45 = vld [vmem:[#allocation5 + $0x60] sm:$0xff]  ;;  %v57_v46 = vld [vmem:[#allocation5 + $0x68] sm:$0xff]  ;;  %v58_v51 = vld [vmem:[#allocation5 + $0x70] sm:$0xff]  ;;  %p519_p5 = por %p518_p4, %p517_p3 }
  0x2d   :  { %430 = vmatprep.subr.bf16.mxu1 %v544_v0  ;;  %149 = vadd.xlane.f32.xlu0 %v145_v21  ;;  %v434_v29 = vpack.c.bf16 %v162_v26, %v161_v25  ;;  %v165_v37 = vmul.f32 %v52_v33, %v52_v33  ;;  %v166_v38 = vmul.f32 %v53_v34, %v53_v34  ;;  %v59_v52 = vld [vmem:[#allocation5 + $0x78] sm:$0xff]  ;;  %v245_v63 = vsub.s32 0, %v244_v62 }
  0x2e   :  { %v437_v35 = vpack.c.bf16 %v164_v32, %v163_v31  ;;  %v415_v42 = vpack.c.bf16 %v55_v40, %v54_v39  ;;  %v167_v43 = vmul.f32 %v54_v39, %v54_v39  ;;  %v168_v44 = vmul.f32 %v55_v40, %v55_v40  ;;  %p520_p6 = pnand %p519_p5, %p513_p2 }
  0x2f   :  { %155 = vadd.xlane.f32.xlu1 %v148_v23  ;;  %v440_v41 = vpack.c.bf16 %v166_v38, %v165_v37  ;;  %v419_v48 = vpack.c.bf16 %v57_v46, %v56_v45  ;;  %v169_v49 = vmul.f32 %v56_v45, %v56_v45  ;;  %v170_v50 = vmul.f32 %v57_v46, %v57_v46 }
  0x30   :  { %v443_v47 = vpack.c.bf16 %v168_v44, %v167_v43  ;;  %v423_v54 = vpack.c.bf16 %v59_v52, %v58_v51  ;;  %v171_v55 = vmul.f32 %v58_v51, %v58_v51  ;;  %v172_v56 = vmul.f32 %v59_v52, %v59_v52 }
  0x31   :  { %151 = vadd.xlane.f32.xlu0 %v146_v24  ;;  %v446_v53 = vpack.c.bf16 %v170_v50, %v169_v49 }
  0x32   :  { %v449_v57 = vpack.c.bf16 %v172_v56, %v171_v55 }
  0x33   :  { %402 = vmatpush3.bf16.xpose.msra.mxu0 %v399_v9 }
  0x34   :  { %432 = vmatpush3.bf16.xpose.msra.mxu1 %v431_v18  ;;  %404 = vmatprep.subr.bf16.mxu0 %v403_v19 }
  0x35   :  { %433 = vmatprep.subr.bf16.mxu1 %v544_v0 }
  0x3b   :  { %406 = vmatpush3.bf16.xpose.msra.mxu0 %v403_v19 }
  0x3c   :  { %435 = vmatpush3.bf16.xpose.msra.mxu1 %v434_v29  ;;  %408 = vmatprep.subr.bf16.mxu0 %v407_v30 }
  0x3d   :  { %436 = vmatprep.subr.bf16.mxu1 %v544_v0 }
  0x43   :  { %410 = vmatpush3.bf16.xpose.msra.mxu0 %v407_v30 }
  0x44   :  { %438 = vmatpush3.bf16.xpose.msra.mxu1 %v437_v35  ;;  %412 = vmatprep.subr.bf16.mxu0 %v411_v36 }
  0x45   :  { %439 = vmatprep.subr.bf16.mxu1 %v544_v0 }
  0x4b   :  { %414 = vmatpush3.bf16.xpose.msra.mxu0 %v411_v36 }
  0x4c   :  { %441 = vmatpush3.bf16.xpose.msra.mxu1 %v440_v41  ;;  %416 = vmatprep.subr.bf16.mxu0 %v415_v42 }
  0x4d   :  { %442 = vmatprep.subr.bf16.mxu1 %v544_v0 }
  0x53   :  { %418 = vmatpush3.bf16.xpose.msra.mxu0 %v415_v42 }
  0x54   :  { %444 = vmatpush3.bf16.xpose.msra.mxu1 %v443_v47  ;;  %420 = vmatprep.subr.bf16.mxu0 %v419_v48 }
  0x55   :  { %445 = vmatprep.subr.bf16.mxu1 %v544_v0 }
  0x5b   :  { %422 = vmatpush3.bf16.xpose.msra.mxu0 %v419_v48 }
  0x5c   :  { %447 = vmatpush3.bf16.xpose.msra.mxu1 %v446_v53  ;;  %424 = vmatprep.subr.bf16.mxu0 %v423_v54 }
  0x5d   :  { %448 = vmatprep.subr.bf16.mxu1 %v544_v0 }
  0x63   :  { %426 = vmatpush3.bf16.xpose.msra.mxu0 %v423_v54 }
  0x64   :  { %450 = vmatpush3.bf16.xpose.msra.mxu1 %v449_v57 }
  0x6a   :  { %355 = vmatmul.mubr.f32.vlgmr.msra.gmra.mrb[0].mxu0 %v602_v22 }
  0x6b   :  { %393 = vmatmul.mubr.f32.vlgmr.msra.gmra.mrb[0].mxu1 %v547_v58  ;;  %357 = vmatprep.mubr.f32.mxu0 %v596_v14 }
  0x6e   :  { %358 = vmatmul.mubr.f32.gmra.mrb[2].mxu0 %v600_v20 }
  0xb8   :  { %v154_v60 = vpop.xlane.xlu1 %153 }
  0xba   :  { %v150_v61 = vpop.xlane.xlu0 %149 }
  0xbc   :  { %v156_v1 = vpop.xlane.xlu1 %155 }
  0xbe   :  { %v152_v2 = vpop.xlane.xlu0 %151 }
 0x13d   :  { %v356_v3 = vpop.f32.mrb[0].mxu0 }
 0x13e   :  { %v239_v0 = vpop.f32.mrb[0].mxu1  ;;  %v126_v4 = vpop.f32.mrb[1].mxu0 }
 0x13f   :  { %v246_v5 = vrot.slane %v239_v0, %v245_v63  ;;  %v394_v6 = vpop.f32.mrb[1].mxu1 }
 0x141   :  { %v247_v7 = vmul.f32 %v246_v5, %v150_v61  ;;  %v249_v8 = vmul.f32 %v246_v5, %v154_v60  ;;  %v250_v9 = vmul.f32 %v246_v5, %v156_v1  ;;  %v248_v10 = vmul.f32 %v246_v5, %v152_v2  ;;  %v359_v11 = vpop.f32.mrb[2].mxu0 }
 0x142   :  { %v136_v12 = vpop.f32.mrb[3].mxu0 }
 0x143   :  { %v251_v13 = vmax.f32 %v247_v7, 1e-16  ;;  %v253_v14 = vmax.f32 %v249_v8, 1e-16  ;;  %v254_v15 = vmax.f32 %v250_v9, 1e-16 }
 0x144   :  { %v252_v16 = vmax.f32 %v248_v10, 1e-16 }
 0x145   :  { %460 = vrsqrt.f32 %v251_v13 }
 0x146   :  { %462 = vrsqrt.f32 %v253_v14 }
 0x147   :  { %464 = vrsqrt.f32 %v254_v15 }
 0x148   :  { %466 = vrsqrt.f32 %v252_v16 }
 0x14f   :  { %v461_v17 = vpop.eup %460 }
 0x150   :  { %v463_v18 = vpop.eup %462  ;;  %v259_v19 = vmul.f32 %v461_v17, %v126_v4 }
 0x151   :  { %v465_v20 = vpop.eup %464  ;;  %v261_v21 = vmul.f32 %v463_v18, %v136_v12 }
 0x152   :  { %v467_v22 = vpop.eup %466  ;;  %263 = vst [vmem:[#allocation7] sm:$0xff] %v259_v19  ;;  %v262_v23 = vmul.f32 %v465_v20, %v359_v11 }
 0x153   :  { %v260_v24 = vmul.f32 %v467_v22, %v356_v3  ;;  %265 = vst [vmem:[#allocation7 + $0x10] sm:$0xff] %v261_v21 }
 0x154   :  { %266 = vst [vmem:[#allocation7 + $0x18] sm:$0xff] %v262_v23 }
 0x155   :  { %264 = vst [vmem:[#allocation7 + $0x8] sm:$0xff] %v260_v24 }
 0x156   :  { %523 = shalt.err (!%p520_p6)
}
 0x157   :  { %s524_s10 = scalar_lea.hbm %s634_s2, 512 }
 0x158   :  { %p525_p7 = scmp.ne.s32.totalorder %s634_s2, %s524_s10  ;;  %p528_p8 = scmp.lt.u32.totalorder %s524_s10, %s634_s2 }
 0x15a   :  { %p530_p9 = pnand %p528_p8, %p525_p7 }
 0x15c   :  { %533 = shalt.err (!%p530_p9)
}
 0x15d   :  { %278 = dma.vmem_to_hbm [thread:$0]  %s273_s6, 512, %s634_s2, [#allocation4], %s541_s19, %s541_s19, %s542_s20  }
 0x15e   :  { %538 = dma.done.wait [#allocation4], 512  }
 0x15f   :  { %539 = vsyncadd [#allocation4], 4294966784 }
 0x160   :  { %282 = vsyncpa [#allocation3], 1 }
 0x161   :  { %283 = vsyncpa [#allocation6], 1 }
 0x162   :  { %284 = vsyncpa [#allocation4], 1 }

</bundles_post_ra>
